<compile_context>
chip_gen: v7x
topology: tpu7x:2x2x1
jax: 0.10.0
libtpu: 0.0.40
codegen_flags: <defaults>
</compile_context>

<pallas_src>
import jax
import jax.numpy as jnp
from jax.experimental import pallas as pl
from jax.experimental.pallas import tpu as pltpu


IN_DIM = 2
HIDDEN = 400
OUT_DIM = 2
HIDDEN_PAD = 512   # 400 pads to 512 lanes in VMEM anyway; make it explicit
OUT_PAD = 128      # lane-dense output slab; real 2 columns sliced outside


def _round_up(x, m):
    return (x + m - 1) // m * m


def generator_kernel(x_ref, w1_ref, b1_ref, w2_ref, b2_ref, w3_ref, b3_ref, o_ref):
    x = x_ref[...]                                   # (TB, 2) f32
    w1 = w1_ref[...]                                 # (2, HIDDEN_PAD)
    # Layer 1 (K=2): degenerate matmul -> keep it off the MXU; VPU broadcast FMAs.
    h = x[:, 0:1] * w1[0:1, :] + x[:, 1:2] * w1[1:2, :] + b1_ref[...]
    h = jnp.maximum(h, 0.0)
    # Layer 2: 512x512 matmul on the MXU, f32 accumulation.
    h = jnp.dot(h, w2_ref[...], preferred_element_type=jnp.float32) + b2_ref[...]
    h = jnp.maximum(h, 0.0)
    # Layer 3: 512x128 matmul (N padded to 128 => unmasked full-lane store).
    out = jnp.dot(h, w3_ref[...], preferred_element_type=jnp.float32) + b3_ref[...]
    o_ref[...] = out.astype(o_ref.dtype)


def pad_params(params):
    """Pad weights/biases ONCE (hoisted out of the per-call path).

    Zero-padding hidden 400->512 and output 2->128 is mathematically exact:
    relu(0)=0 and zero K-rows / N-cols contribute nothing.
    """
    w1, b1, w2, b2, w3, b3 = params
    hp = HIDDEN_PAD - HIDDEN
    op = OUT_PAD - OUT_DIM
    w1p = jnp.pad(w1, ((0, 0), (0, hp)))
    b1p = jnp.pad(b1, ((0, 0), (0, hp)))
    w2p = jnp.pad(w2, ((0, hp), (0, hp)))
    b2p = jnp.pad(b2, ((0, 0), (0, hp)))
    w3p = jnp.pad(w3, ((0, hp), (0, op)))
    b3p = jnp.pad(b3, ((0, 0), (0, op)))
    return (w1p, b1p, w2p, b2p, w3p, b3p)


def generator_forward(x, padded_params, *, block_batch=512):
    """x: [B, 2] f32; padded_params from pad_params(). Returns [B, 2] f32."""
    w1p, b1p, w2p, b2p, w3p, b3p = padded_params
    B = x.shape[0]

    # Batch tile: 8-aligned (defensive even if caller passes odd block_batch),
    # capped so the grid has >= 2 steps (v7x: both TensorCores get work).
    TB = min(block_batch, pl.cdiv(_round_up(B, 8), 2))
    TB = max(_round_up(TB, 8), 8)
    B_pad = _round_up(B, TB)
    B_pad = max(B_pad, 2 * TB)          # guarantee >= 2 grid steps
    grid = (B_pad // TB,)

    xp = jnp.pad(x, ((0, B_pad - B), (0, 0)))

    def resident(a):
        # Same block index every grid step -> array stays VMEM-resident (no re-DMA).
        return pl.BlockSpec(a.shape, lambda i: (0, 0))

    # Cost model over the PADDED problem that is actually moved/computed.
    cost = pl.CostEstimate(
        flops=2 * B_pad * (IN_DIM * HIDDEN_PAD
                           + HIDDEN_PAD * HIDDEN_PAD
                           + HIDDEN_PAD * OUT_PAD),
        transcendentals=0,
        bytes_accessed=4 * (xp.size + w1p.size + b1p.size + w2p.size + b2p.size
                            + w3p.size + b3p.size + B_pad * OUT_PAD),
    )

    out_pad = pl.pallas_call(
        generator_kernel,
        out_shape=jax.ShapeDtypeStruct((B_pad, OUT_PAD), jnp.float32),
        grid=grid,
        in_specs=[
            pl.BlockSpec((TB, IN_DIM), lambda i: (i, 0)),   # x: tiled over batch
            resident(w1p), resident(b1p),
            resident(w2p), resident(b2p),
            resident(w3p), resident(b3p),
        ],
        out_specs=pl.BlockSpec((TB, OUT_PAD), lambda i: (i, 0)),
        compiler_params=pltpu.CompilerParams(
            dimension_semantics=("parallel",),              # v7x: split batch across TCs
        ),
        cost_estimate=cost,
    )(xp, w1p, b1p, w2p, b2p, w3p, b3p)

    return out_pad[:B, :OUT_DIM]


def init_params(key, in_dim=IN_DIM, hidden=HIDDEN, out_dim=OUT_DIM):
    # PyTorch-style Linear init: uniform(-1/sqrt(fan_in), 1/sqrt(fan_in)).
    def linear(key, fan_in, fan_out):
        kw, kb = jax.random.split(key)
        bound = 1.0 / jnp.sqrt(fan_in)
        w = jax.random.uniform(kw, (fan_in, fan_out), jnp.float32, -bound, bound)
        b = jax.random.uniform(kb, (1, fan_out), jnp.float32, -bound, bound)
        return w, b

    k1, k2, k3 = jax.random.split(key, 3)
    w1, b1 = linear(k1, in_dim, hidden)
    w2, b2 = linear(k2, hidden, hidden)
    w3, b3 = linear(k3, hidden, out_dim)
    return (w1, b1, w2, b2, w3, b3)


def reference_forward(x, params):
    w1, b1, w2, b2, w3, b3 = params
    h = x @ w1 + b1
    h = jnp.maximum(h, 0.0) @ w2 + b2
    h = jnp.maximum(h, 0.0) @ w3 + b3
    return h


if __name__ == "__main__":
    key = jax.random.PRNGKey(0)
    kx, kp = jax.random.split(key)

    batch = 8
    x = jax.random.normal(kx, (batch, IN_DIM), jnp.float32)
    params = init_params(kp)

    padded = pad_params(params)          # pad weights ONCE, reuse across calls
    padded = jax.block_until_ready(padded)

    out = generator_forward(x, padded)
    out = jax.block_until_ready(out)

    ref = reference_forward(x, params)
    assert out.shape == (batch, OUT_DIM)
    assert jnp.allclose(out, ref, atol=1e-4, rtol=1e-4)

    print("KERNEL_OK")
</pallas_src>

<mosaic_0001>
module attributes {stable_mosaic.version = 11 : i64} {
  func.func @generator_kernel(%arg0: i32, %arg1: memref<8x2xf32, #tpu.memory_space<vmem>>, %arg2: memref<2x512xf32, #tpu.memory_space<vmem>>, %arg3: memref<1x512xf32, #tpu.memory_space<vmem>>, %arg4: memref<512x512xf32, #tpu.memory_space<vmem>>, %arg5: memref<1x512xf32, #tpu.memory_space<vmem>>, %arg6: memref<512x128xf32, #tpu.memory_space<vmem>>, %arg7: memref<1x128xf32, #tpu.memory_space<vmem>>, %arg8: memref<8x128xf32, #tpu.memory_space<vmem>>) attributes {dimension_semantics = [#tpu.dimension_semantics<parallel>], iteration_bounds = array<i64: 2>, scalar_prefetch = 0 : i64, scratch_operands = 0 : i64, tpu.core_type = #tpu.core_type<tc>, window_params = [{transform_indices = @transform_0, window_bounds = array<i64: 8, 2>}, {pipeline_mode = #tpu.pipeline_mode<synchronous>, transform_indices = @transform_1, window_bounds = array<i64: 2, 512>}, {pipeline_mode = #tpu.pipeline_mode<synchronous>, transform_indices = @transform_2, window_bounds = array<i64: 1, 512>}, {pipeline_mode = #tpu.pipeline_mode<synchronous>, transform_indices = @transform_3, window_bounds = array<i64: 512, 512>}, {pipeline_mode = #tpu.pipeline_mode<synchronous>, transform_indices = @transform_4, window_bounds = array<i64: 1, 512>}, {pipeline_mode = #tpu.pipeline_mode<synchronous>, transform_indices = @transform_5, window_bounds = array<i64: 512, 128>}, {pipeline_mode = #tpu.pipeline_mode<synchronous>, transform_indices = @transform_6, window_bounds = array<i64: 1, 128>}, {transform_indices = @transform_7, window_bounds = array<i64: 8, 128>}]} {
    %c0 = arith.constant 0 : index
    %c0_0 = arith.constant 0 : index
    %0 = vector.load %arg1[%c0, %c0_0] : memref<8x2xf32, #tpu.memory_space<vmem>>, vector<8x2xf32>
    %c0_1 = arith.constant 0 : index
    %c0_2 = arith.constant 0 : index
    %1 = vector.load %arg2[%c0_1, %c0_2] : memref<2x512xf32, #tpu.memory_space<vmem>>, vector<2x512xf32>
    %2 = vector.extract_strided_slice %0 {offsets = [0, 0], sizes = [8, 1], strides = [1, 1]} : vector<8x2xf32> to vector<8x1xf32>
    %3 = vector.extract_strided_slice %1 {offsets = [0, 0], sizes = [1, 512], strides = [1, 1]} : vector<2x512xf32> to vector<1x512xf32>
    %4 = vector.broadcast %2 : vector<8x1xf32> to vector<8x512xf32>
    %5 = vector.broadcast %3 : vector<1x512xf32> to vector<8x512xf32>
    %6 = arith.mulf %4, %5 : vector<8x512xf32>
    %7 = vector.extract_strided_slice %0 {offsets = [0, 1], sizes = [8, 1], strides = [1, 1]} : vector<8x2xf32> to vector<8x1xf32>
    %8 = vector.extract_strided_slice %1 {offsets = [1, 0], sizes = [1, 512], strides = [1, 1]} : vector<2x512xf32> to vector<1x512xf32>
    %9 = vector.broadcast %7 : vector<8x1xf32> to vector<8x512xf32>
    %10 = vector.broadcast %8 : vector<1x512xf32> to vector<8x512xf32>
    %11 = arith.mulf %9, %10 : vector<8x512xf32>
    %12 = arith.addf %6, %11 : vector<8x512xf32>
    %c0_3 = arith.constant 0 : index
    %c0_4 = arith.constant 0 : index
    %13 = vector.load %arg3[%c0_3, %c0_4] : memref<1x512xf32, #tpu.memory_space<vmem>>, vector<1x512xf32>
    %14 = vector.broadcast %13 : vector<1x512xf32> to vector<8x512xf32>
    %15 = arith.addf %12, %14 : vector<8x512xf32>
    %cst = arith.constant 0.000000e+00 : f32
    %16 = vector.broadcast %cst : f32 to vector<8x512xf32>
    %17 = arith.maximumf %15, %16 : vector<8x512xf32>
    %c0_5 = arith.constant 0 : index
    %c0_6 = arith.constant 0 : index
    %18 = vector.load %arg4[%c0_5, %c0_6] : memref<512x512xf32, #tpu.memory_space<vmem>>, vector<512x512xf32>
    %cst_7 = arith.constant dense<0.000000e+00> : vector<8x512xf32>
    %19 = tpu.matmul %17, %18, %cst_7 {dimension_numbers = #tpu.dot_dimension_numbers<[1], [0], [0], [1], [0, 0, 1, 1], [], []>} : vector<8x512xf32>, vector<512x512xf32>, vector<8x512xf32> -> vector<8x512xf32>
    %c0_8 = arith.constant 0 : index
    %c0_9 = arith.constant 0 : index
    %20 = vector.load %arg5[%c0_8, %c0_9] : memref<1x512xf32, #tpu.memory_space<vmem>>, vector<1x512xf32>
    %21 = vector.broadcast %20 : vector<1x512xf32> to vector<8x512xf32>
    %22 = arith.addf %19, %21 : vector<8x512xf32>
    %cst_10 = arith.constant 0.000000e+00 : f32
    %23 = vector.broadcast %cst_10 : f32 to vector<8x512xf32>
    %24 = arith.maximumf %22, %23 : vector<8x512xf32>
    %c0_11 = arith.constant 0 : index
    %c0_12 = arith.constant 0 : index
    %25 = vector.load %arg6[%c0_11, %c0_12] : memref<512x128xf32, #tpu.memory_space<vmem>>, vector<512x128xf32>
    %cst_13 = arith.constant dense<0.000000e+00> : vector<8x128xf32>
    %26 = tpu.matmul %24, %25, %cst_13 {dimension_numbers = #tpu.dot_dimension_numbers<[1], [0], [0], [1], [0, 0, 1, 1], [], []>} : vector<8x512xf32>, vector<512x128xf32>, vector<8x128xf32> -> vector<8x128xf32>
    %c0_14 = arith.constant 0 : index
    %c0_15 = arith.constant 0 : index
    %27 = vector.load %arg7[%c0_14, %c0_15] : memref<1x128xf32, #tpu.memory_space<vmem>>, vector<1x128xf32>
    %28 = vector.broadcast %27 : vector<1x128xf32> to vector<8x128xf32>
    %29 = arith.addf %26, %28 : vector<8x128xf32>
    %c0_16 = arith.constant 0 : index
    %c0_17 = arith.constant 0 : index
    %30 = vector.load %arg8[%c0_16, %c0_17] : memref<8x128xf32, #tpu.memory_space<vmem>>, vector<8x128xf32>
    tpu.vector_store %arg8[%c0_16, %c0_17], %29 {strides = array<i32>} : memref<8x128xf32, #tpu.memory_space<vmem>>, vector<8x128xf32>,
    return
  }
  func.func @transform_0(%arg0: i32) -> (i32, i32) {
    %c0_i32 = arith.constant 0 : i32
    %c0_i32_0 = arith.constant 0 : i32
    return %arg0, %c0_i32 : i32, i32
  }
  func.func @transform_1(%arg0: i32) -> (i32, i32) {
    %c0_i32 = arith.constant 0 : i32
    %c0_i32_0 = arith.constant 0 : i32
    %c0_i32_1 = arith.constant 0 : i32
    return %c0_i32, %c0_i32_0 : i32, i32
  }
  func.func @transform_2(%arg0: i32) -> (i32, i32) {
    %c0_i32 = arith.constant 0 : i32
    %c0_i32_0 = arith.constant 0 : i32
    %c0_i32_1 = arith.constant 0 : i32
    return %c0_i32, %c0_i32_0 : i32, i32
  }
  func.func @transform_3(%arg0: i32) -> (i32, i32) {
    %c0_i32 = arith.constant 0 : i32
    %c0_i32_0 = arith.constant 0 : i32
    %c0_i32_1 = arith.constant 0 : i32
    return %c0_i32, %c0_i32_0 : i32, i32
  }
  func.func @transform_4(%arg0: i32) -> (i32, i32) {
    %c0_i32 = arith.constant 0 : i32
    %c0_i32_0 = arith.constant 0 : i32
    %c0_i32_1 = arith.constant 0 : i32
    return %c0_i32, %c0_i32_0 : i32, i32
  }
  func.func @transform_5(%arg0: i32) -> (i32, i32) {
    %c0_i32 = arith.constant 0 : i32
    %c0_i32_0 = arith.constant 0 : i32
    %c0_i32_1 = arith.constant 0 : i32
    return %c0_i32, %c0_i32_0 : i32, i32
  }
  func.func @transform_6(%arg0: i32) -> (i32, i32) {
    %c0_i32 = arith.constant 0 : i32
    %c0_i32_0 = arith.constant 0 : i32
    %c0_i32_1 = arith.constant 0 : i32
    return %c0_i32, %c0_i32_0 : i32, i32
  }
  func.func @transform_7(%arg0: i32) -> (i32, i32) {
    %c0_i32 = arith.constant 0 : i32
    %c0_i32_0 = arith.constant 0 : i32
    return %arg0, %c0_i32 : i32, i32
  }
}

</mosaic_0001>

<bundles_post_ra>
// kernel: tpu_custom_call.1
= control target key start
LH: loop header
LB: loop body
LE: loop exit
PB: predicated region body
PF: predicated region fallthrough
CT: control target
= control target key end

     0   :  { %12 = vsyncpa [#allocation3], 0  ;;  %s2202_s0 = inlined_call_operand.vmem [shape: f32[16,2], index: 0, kind: input, shape index: {}]   ;;  %s2203_s1 = inlined_call_operand.vmem [shape: f32[2,512], index: 1, kind: input, shape index: {}]   ;;  %s2204_s2 = inlined_call_operand.vmem [shape: f32[1,512], index: 2, kind: input, shape index: {}]   ;;  %s2205_s3 = inlined_call_operand.hbm [shape: f32[512,512], index: 3, kind: input, shape index: {}]   ;;  %s2206_s4 = inlined_call_operand.vmem [shape: f32[1,512], index: 4, kind: input, shape index: {}]   ;;  %s2207_s5 = inlined_call_operand.hbm [shape: f32[512,128], index: 5, kind: input, shape index: {}]   ;;  %s2208_s6 = inlined_call_operand.vmem [shape: f32[1,128], index: 6, kind: input, shape index: {}]   ;;  %s2209_s7 = inlined_call_operand.hbm [shape: f32[16,128], index: 7, kind: output, shape index: {}]  }
   0x1   :  { %13 = vsyncpa [#allocation6], 0 }
   0x2   :  { %14 = vsyncpa [#allocation4], 0 }
   0x3   :  { %16 = vsyncpa [#allocation4 + $0x1], 0  ;;  %s1961_s24 = smov 0   ;;  %s1963_s25 = smov 0  }
   0x4   :  { %s1965_s26 = smov 0   ;;  %s1967_s27 = smov 0  }
   0x5 LB: > { %s1982_s28 = sadd.s32 4294967295, %s1910_s27   ;;  %s1303_s29 = sadd.s32 4294967294, %s1910_s27   ;;  %s1910_s27 = sphi %s1967_s27, %s2229_s27   ;;  %s1906_s26 = sphi %s1965_s26, %s2228_s26   ;;  %s1902_s25 = sphi %s1963_s25, %s2227_s25   ;;  %s1898_s24 = sphi %s1961_s24, %s2226_s24  }
   0x6   : > { %s1986_s30 = sadd.s32 1, %s1910_s27   ;;  %s181_s8 = sadd.s32 1, %s1906_s26 }
   0x7   : > { %s178_s9 = ssub.s32 %s1910_s27, %s1986_s30  ;;  %p191_p0 = scmp.ne.s32.totalorder %s1906_s26, %s1902_s25 }
   0x8   : > { %p179_p1 = scmp.eq.s32.totalorder %s178_s9, 0  ;;  %p192_p2 = scmp.eq.s32.totalorder %s1982_s28, 1 }
   0x9   : > { %p197_p3 = scmp.ne.s32.totalorder %s1902_s25, %s1898_s24  ;;  %p198_p4 = scmp.eq.s32.totalorder %s1303_s29, 1 }
   0xa   : > { %s1997_s10 = scalar_select %p179_p1, %s1906_s26, %s181_s8  }
   0xb   : > { %p1999_p5 = por %p192_p2, %p191_p0  ;;  %p2003_p6 = por %p198_p4, %p197_p3 }
   0xc   : > { %2213 = sst [smem:[#allocation11_spill]] %s1997_s10  ;;  %p1304_p7 = scmp.ge.s32.totalorder %s1910_s27, 1 }
   0xd   : > { %s2214_s11 = scalar_select %p1999_p5, 1, 0 }
   0xe   : > { %s2215_s12 = scalar_select %p2003_p6, 1, 0 }
   0xf   : > { %p205_p8 = scmp.lt.s32.totalorder %s1910_s27, 3  ;;  %p2210_p9 = scmp.eq.s32.totalorder %s1982_s28, 0 }
  0x10   : > { %s1912_s14 = smov [#allocation2]   ;;  %s1913_s17 = smov [#allocation5]  }
  0x11   : > { %p2010_p10 = pnand %p1304_p7, %p205_p8  ;;  %s223_s15 = sshll.u32 %s1912_s14, 4  ;;  %s224_s15 = int_to_ptr.vmem [resolvable:$true] %s223_s15 }
  0x12   : > { %s239_s18 = sshll.u32 %s1913_s17, 4  ;;  %s1784_s21 = scalar_lea.hbm %s2205_s3, 32768  ;;  %s2022_s18 = int_to_ptr.vmem [resolvable:$true] %s239_s18 }
  0x13   : > { %s2216_s13 = scalar_select %p2010_p10, 1, 0 }
  0x14   : > { %p1726_p11 = pneg %p2010_p10  ;;  %p1785_p13 = scmp.ne.s32.totalorder %s2205_s3, %s1784_s21 }
  0x15   : > { %p1791_p3 = scmp.lt.u32.totalorder %s1784_s21, %s2205_s3 }
  0x16   : > { %p2018_p12 = pnand %p2210_p9, %p1726_p11 }
  0x18   : > { %p1786_p0 = pneg %p2018_p12 }
  0x1a   : > { %p1787_p1 = pnand %p1786_p0, %p1785_p13 }
  0x1c   : > { %p1788_p2 = pneg %p1787_p1 }
  0x1e   : > { %p1793_p4 = pnand %p1791_p3, %p1788_p2 }
  0x20   : > { %1796 = shalt.err (!%p1793_p4)
}
  0x21   : > { %s1797_s9 = scalar_lea.vmem %s224_s15, 32768  ;;  %p1805_p9 = scmp.lt.s32.totalorder %s224_s15, %s224_s15 }
  0x22   : > { %p1798_p7 = scmp.ne.s32.totalorder %s224_s15, %s1797_s9  ;;  %p1806_p6 = scmp.lt.s32.totalorder %s1797_s9, %s1797_s9 }
  0x24   : > { %p1800_p8 = pnand %p1798_p7, %p1786_p0  ;;  %p1807_p5 = por %p1806_p6, %p1805_p9 }
  0x26   : > { %p1801_p11 = pneg %p1800_p8 }
  0x28   : > { %p1808_p10 = pnand %p1807_p5, %p1801_p11 }
  0x2a   : > { %1811 = shalt.err (!%p1808_p10)
}
  0x2b   : > { %s1914_s14 = smov 512   ;;  %s1915_s17 = smov 32  }
  0x2c   : > { %1729 = dma.hbm_to_vmem [thread:$0]  (!%p2018_p12), %s2205_s3, 32768, %s224_s15, [#allocation3], %s1914_s14, %s1914_s14, %s1915_s17  }
  0x2d   : > { %s1812_s23 = scalar_lea.hbm %s2207_s5, 8192 }
  0x2e   : > { %p1813_p13 = scmp.ne.s32.totalorder %s2207_s5, %s1812_s23  ;;  %p1819_p9 = scmp.lt.u32.totalorder %s1812_s23, %s2207_s5 }
  0x30   : > { %p1815_p5 = pnand %p1813_p13, %p1786_p0 }
  0x32   : > { %p1816_p6 = pneg %p1815_p5 }
  0x34   : > { %p1821_p10 = pnand %p1819_p9, %p1816_p6 }
  0x36   : > { %1824 = shalt.err (!%p1821_p10)
}
  0x37   : > { %s1825_s15 = scalar_lea.vmem %s2022_s18, 8192  ;;  %p1833_p4 = scmp.lt.s32.totalorder %s2022_s18, %s2022_s18 }
  0x38   : > { %p1826_p1 = scmp.ne.s32.totalorder %s2022_s18, %s1825_s15  ;;  %p1834_p7 = scmp.lt.s32.totalorder %s1825_s15, %s1825_s15 }
  0x3a   : > { %p1828_p2 = pnand %p1826_p1, %p1786_p0  ;;  %p1835_p8 = por %p1834_p7, %p1833_p4 }
  0x3c   : > { %p1829_p3 = pneg %p1828_p2 }
  0x3e   : > { %p1836_p11 = pnand %p1835_p8, %p1829_p3 }
  0x40   : > { %1839 = shalt.err (!%p1836_p11)
}
  0x41   : > { %s1916_s10 = smov 128   ;;  %s1917_s14 = smov 8  }
  0x42   : > { %1732 = dma.hbm_to_vmem [thread:$0]  (!%p2018_p12), %s2207_s5, 8192, %s2022_s18, [#allocation6], %s1916_s10, %s1916_s10, %s1917_s14  }
  0x43   : > { %p2218_p13 = scmp.ne.s32.totalorder %s2216_s13, 0 }
  0x44   : > { %p2219_p0 = scmp.eq.s32.totalorder (!%p2218_p13), %s1982_s28, 0 }
  0x45   : > { %265 = sbr.rel (%p2218_p13) target bundleno = 744 (0x2e8), region = 48 }
  0x4c   : > { %1885 = dma.done.wait (%p2219_p0), [#allocation3], 32768   ;;  %p2220_p5 = pmov %p2219_p0 }
  0x4d   : > { %p2221_p6 = pmov %p2219_p0 }
  0x4e   : > { %1887 = vsyncadd (%p2220_p5), [#allocation3], 4294934528 }
  0x4f   : > { %1889 = dma.done.wait (%p2221_p6), [#allocation6], 8192   ;;  %p2222_p9 = pmov %p2219_p0 }
  0x50   : > { %p300_p10 = scmp.lt.s32.totalorder %s1982_s28, 1  ;;  %v1918_v0 = vmov 0   ;;  %v431_v2 = vld [vmem:[#allocation2 + $0x8] sm:$0xff]  ;;  %v433_v5 = vld [vmem:[#allocation2 + $0x18] sm:$0xff]  ;;  %v430_v7 = vld [vmem:[#allocation2] sm:$0xff]  ;;  %v1919_v21 = vmov 1  }
  0x51   : > { %1891 = vsyncadd (%p2222_p9), [#allocation6], 4294959104  ;;  %1782 = vset.pattern.permute.xlu0 %v1918_v0  ;;  %v435_v3 = vld [vmem:[#allocation2 + $0x28] sm:$0xff]  ;;  %v437_v6 = vld [vmem:[#allocation2 + $0x38] sm:$0xff]  ;;  %s297_s10 = sand.u32 1, %s1902_s25   ;;  %p2223_p1 = scmp.ne.s32.totalorder %s2214_s11, 0 }
  0x52   : > { %s301_s16 = scalar_select %p300_p10, %s1982_s28, 1  ;;  %v1388_v4 = vpack.c.bf16 %v435_v3, %v431_v2  ;;  %v1516_v8 = vpack.c.bf16 %v437_v6, %v433_v5  ;;  %v434_v9 = vld [vmem:[#allocation2 + $0x20] sm:$0xff]  ;;  %v432_v10 = vld [vmem:[#allocation2 + $0x10] sm:$0xff]  ;;  %v439_v14 = vld [vmem:[#allocation2 + $0x48] sm:$0xff] }
  0x53   : > { %v436_v11 = vld [vmem:[#allocation2 + $0x30] sm:$0xff]  ;;  %v1390_v12 = vpack.c.bf16 %v434_v9, %v430_v7  ;;  %v443_v15 = vld [vmem:[#allocation2 + $0x68] sm:$0xff]  ;;  %v441_v16 = vld [vmem:[#allocation2 + $0x58] sm:$0xff]  ;;  %s1311_s14 = sshll.u32 %s297_s10, 3  ;;  %s1209_s23 = scalar_lea.sflag [#allocation4], %s297_s10 }
  0x54   : > { %s1312_s13 = sshll.u32 %s301_s16, 3  ;;  %1389 = vmatprep.subr.bf16.mxu0 %v1388_v4  ;;  %v1518_v13 = vpack.c.bf16 %v436_v11, %v432_v10  ;;  %1517 = vmatprep.subr.bf16.mxu1 %v1516_v8  ;;  %v1392_v17 = vpack.c.bf16 %v443_v15, %v439_v14  ;;  %v445_v18 = vld [vmem:[#allocation2 + $0x78] sm:$0xff]  ;;  %v438_v19 = vld [vmem:[#allocation2 + $0x40] sm:$0xff]  ;;  %v440_v24 = vld [vmem:[#allocation2 + $0x50] sm:$0xff]  ;;  %s1315_s16 = sshll.u32 %s1982_s28, 7 }
  0x55   : > { %s303_s21 = scalar_lea.vmem %s2202_s0, %s1312_s13  ;;  %v442_v20 = vld [vmem:[#allocation2 + $0x60] sm:$0xff]  ;;  %1391 = vmatpush1.bf16.msra.mxu0 %v1390_v12  ;;  %v1520_v22 = vpack.c.bf16 %v445_v18, %v441_v16  ;;  %v444_v25 = vld [vmem:[#allocation2 + $0x70] sm:$0xff]  ;;  %v447_v26 = vld [vmem:[#allocation2 + $0x88] sm:$0xff]  ;;  %s299_s13 = scalar_lea.vmem [#allocation7], %s1311_s14 }
  0x56   : > { %v304_v1 = vld [vmem:[%s303_s21] sm:$0xff]  ;;  %v1394_v23 = vpack.c.bf16 %v442_v20, %v438_v19  ;;  %1519 = vmatpush1.bf16.msra.mxu1 %v1518_v13  ;;  %v1522_v27 = vpack.c.bf16 %v444_v25, %v440_v24  ;;  %v451_v28 = vld [vmem:[#allocation2 + $0xa8] sm:$0xff]  ;;  %v449_v29 = vld [vmem:[#allocation2 + $0x98] sm:$0xff]  ;;  %1393 = vmatprep.subr.bf16.mxu0 %v1392_v17  ;;  %v312_v25 = vlaneseq  ;;  %s1222_s18 = sshll.u32 %s299_s13, 4  ;;  %s2160_s22 = scalar_lea.hbm %s2209_s7, %s1315_s16  ;;  %s2162_s18 = int_to_ptr.vmem [resolvable:$true] %s1222_s18 }
  0x57   : > { %308 = vperm.xlu0 %1782, %v304_v1   ;;  %v453_v30 = vld [vmem:[#allocation2 + $0xb8] sm:$0xff]  ;;  %1521 = vmatprep.subr.bf16.mxu1 %v1520_v22  ;;  %v1396_v31 = vpack.c.bf16 %v451_v28, %v447_v26  ;;  %v446_v33 = vld [vmem:[#allocation2 + $0x80] sm:$0xff]  ;;  %v448_v35 = vld [vmem:[#allocation2 + $0x90] sm:$0xff]  ;;  %s1840_s29 = scalar_lea.vmem %s2162_s18, 128  ;;  %s1920_s28 = smov [#allocation7]  }
  0x58   : > { %v1524_v32 = vpack.c.bf16 %v453_v30, %v449_v29  ;;  %v450_v34 = vld [vmem:[#allocation2 + $0xa0] sm:$0xff]  ;;  %v452_v36 = vld [vmem:[#allocation2 + $0xb0] sm:$0xff]  ;;  %v455_v37 = vld [vmem:[#allocation2 + $0xc8] sm:$0xff]  ;;  %p1841_p12 = scmp.ne.s32.totalorder %s2162_s18, %s1840_s29  ;;  %s1844_s8 = sshll.u32 %s1920_s28, 4  ;;  %s1845_s8 = int_to_ptr.vmem [resolvable:$false] %s1844_s8 }
  0x59   : > { %v459_v38 = vld [vmem:[#allocation2 + $0xe8] sm:$0xff]  ;;  %1395 = vmatpush1.bf16.msra.mxu0 %v1394_v23  ;;  %v1398_v39 = vpack.c.bf16 %v450_v34, %v446_v33  ;;  %v457_v40 = vld [vmem:[#allocation2 + $0xd8] sm:$0xff]  ;;  %v1526_v42 = vpack.c.bf16 %v452_v36, %v448_v35  ;;  %v454_v44 = vld [vmem:[#allocation2 + $0xc0] sm:$0xff]  ;;  %s1846_s9 = scalar_lea.vmem %s1845_s8, 256  ;;  %p1847_p4 = scmp.lt.s32.totalorder %s2162_s18, %s1845_s8 }
  0x5a   : > { %v461_v41 = vld [vmem:[#allocation2 + $0xf8] sm:$0xff]  ;;  %1523 = vmatpush1.bf16.msra.mxu1 %v1522_v27  ;;  %1397 = vmatprep.subr.bf16.mxu0 %v1396_v31  ;;  %v1400_v43 = vpack.c.bf16 %v459_v38, %v455_v37  ;;  %v458_v45 = vld [vmem:[#allocation2 + $0xe0] sm:$0xff]  ;;  %v456_v46 = vld [vmem:[#allocation2 + $0xd0] sm:$0xff]  ;;  %v2086_v38 = vshrl.u32 %v312_v25, 7  ;;  %p1842_p2 = pnand %p1841_p12, %p2223_p1  ;;  %p1848_p7 = scmp.lt.s32.totalorder %s1846_s9, %s1840_s29 }
  0x5b   : > { %1783 = vset.pattern.permute.xlu0 %v1919_v21  ;;  %1525 = vmatprep.subr.bf16.mxu1 %v1524_v32  ;;  %v1528_v47 = vpack.c.bf16 %v461_v41, %v457_v40  ;;  %v460_v48 = vld [vmem:[#allocation2 + $0xf0] sm:$0xff]  ;;  %v463_v49 = vld [vmem:[#allocation2 + $0x108] sm:$0xff]  ;;  %v465_v51 = vld [vmem:[#allocation2 + $0x118] sm:$0xff]  ;;  %v1402_v53 = vpack.c.bf16 %v458_v45, %v454_v44 }
  0x5c   : > { %353 = vperm.xlu0 %1783, %v304_v1   ;;  %v467_v50 = vld [vmem:[#allocation2 + $0x128] sm:$0xff]  ;;  %v469_v52 = vld [vmem:[#allocation2 + $0x138] sm:$0xff]  ;;  %v1530_v54 = vpack.c.bf16 %v460_v48, %v456_v46  ;;  %v462_v56 = vld [vmem:[#allocation2 + $0x100] sm:$0xff]  ;;  %p1843_p3 = pneg %p1842_p2  ;;  %p1849_p8 = por %p1848_p7, %p1847_p4 }
  0x5d   : > { %1399 = vmatpush1.bf16.msra.mxu0 %v1398_v39  ;;  %v1404_v55 = vpack.c.bf16 %v467_v50, %v463_v49  ;;  %v466_v57 = vld [vmem:[#allocation2 + $0x120] sm:$0xff]  ;;  %v464_v58 = vld [vmem:[#allocation2 + $0x110] sm:$0xff]  ;;  %v1532_v59 = vpack.c.bf16 %v469_v52, %v465_v51  ;;  %v471_v61 = vld [vmem:[#allocation2 + $0x148] sm:$0xff]  ;;  %v322_v51 = vsub.s32 4, %v2086_v38 }
  0x5e   : > { %1527 = vmatpush1.bf16.msra.mxu1 %v1526_v42  ;;  %1401 = vmatprep.subr.bf16.mxu0 %v1400_v43  ;;  %v468_v60 = vld [vmem:[#allocation2 + $0x130] sm:$0xff]  ;;  %v475_v62 = vld [vmem:[#allocation2 + $0x168] sm:$0xff]  ;;  %v473_v63 = vld [vmem:[#allocation2 + $0x158] sm:$0xff]  ;;  %v1406_v1 = vpack.c.bf16 %v466_v57, %v462_v56  ;;  %p1850_p11 = pnand %p1849_p8, %p1843_p3 }
  0x5f   : > { %1529 = vmatprep.subr.bf16.mxu1 %v1528_v47  ;;  %v477_v0 = vld [vmem:[#allocation2 + $0x178] sm:$0xff]  ;;  %v1534_v2 = vpack.c.bf16 %v468_v60, %v464_v58  ;;  %v1408_v3 = vpack.c.bf16 %v475_v62, %v471_v61  ;;  %v470_v4 = vld [vmem:[#allocation2 + $0x140] sm:$0xff]  ;;  %v472_v6 = vld [vmem:[#allocation2 + $0x150] sm:$0xff] }
  0x60   : > { %v474_v5 = vld [vmem:[#allocation2 + $0x160] sm:$0xff]  ;;  %v1536_v7 = vpack.c.bf16 %v477_v0, %v473_v63  ;;  %v476_v8 = vld [vmem:[#allocation2 + $0x170] sm:$0xff]  ;;  %v479_v9 = vld [vmem:[#allocation2 + $0x188] sm:$0xff]  ;;  %v366_v63 = vsub.s32 5, %v2086_v38 }
  0x61   : > { %1403 = vmatpush1.bf16.msra.mxu0 %v1402_v53  ;;  %v483_v10 = vld [vmem:[#allocation2 + $0x1a8] sm:$0xff]  ;;  %v481_v11 = vld [vmem:[#allocation2 + $0x198] sm:$0xff]  ;;  %v1410_v13 = vpack.c.bf16 %v474_v5, %v470_v4  ;;  %v1538_v14 = vpack.c.bf16 %v476_v8, %v472_v6  ;;  %v478_v16 = vld [vmem:[#allocation2 + $0x180] sm:$0xff] }
  0x62   : > { %1531 = vmatpush1.bf16.msra.mxu1 %v1530_v54  ;;  %1405 = vmatprep.subr.bf16.mxu0 %v1404_v55  ;;  %v485_v12 = vld [vmem:[#allocation2 + $0x1b8] sm:$0xff]  ;;  %v1412_v15 = vpack.c.bf16 %v483_v10, %v479_v9  ;;  %v482_v17 = vld [vmem:[#allocation2 + $0x1a0] sm:$0xff]  ;;  %v480_v18 = vld [vmem:[#allocation2 + $0x190] sm:$0xff] }
  0x63   : > { %1533 = vmatprep.subr.bf16.mxu1 %v1532_v59  ;;  %v1540_v19 = vpack.c.bf16 %v485_v12, %v481_v11  ;;  %v484_v20 = vld [vmem:[#allocation2 + $0x1b0] sm:$0xff]  ;;  %v487_v21 = vld [vmem:[#allocation2 + $0x1c8] sm:$0xff]  ;;  %v489_v23 = vld [vmem:[#allocation2 + $0x1d8] sm:$0xff]  ;;  %v1414_v26 = vpack.c.bf16 %v482_v17, %v478_v16 }
  0x64   : > { %v491_v22 = vld [vmem:[#allocation2 + $0x1e8] sm:$0xff]  ;;  %v493_v24 = vld [vmem:[#allocation2 + $0x1f8] sm:$0xff]  ;;  %v1542_v27 = vpack.c.bf16 %v484_v20, %v480_v18  ;;  %v486_v29 = vld [vmem:[#allocation2 + $0x1c0] sm:$0xff] }
  0x65   : > { %1407 = vmatpush1.bf16.msra.mxu0 %v1406_v1  ;;  %v1416_v28 = vpack.c.bf16 %v491_v22, %v487_v21  ;;  %v490_v30 = vld [vmem:[#allocation2 + $0x1e0] sm:$0xff]  ;;  %v488_v31 = vld [vmem:[#allocation2 + $0x1d0] sm:$0xff]  ;;  %v1544_v32 = vpack.c.bf16 %v493_v24, %v489_v23  ;;  %v495_v34 = vld [vmem:[#allocation2 + $0x208] sm:$0xff] }
  0x66   : > { %1535 = vmatpush1.bf16.msra.mxu1 %v1534_v2  ;;  %1409 = vmatprep.subr.bf16.mxu0 %v1408_v3  ;;  %v492_v33 = vld [vmem:[#allocation2 + $0x1f0] sm:$0xff]  ;;  %v499_v35 = vld [vmem:[#allocation2 + $0x228] sm:$0xff]  ;;  %v497_v36 = vld [vmem:[#allocation2 + $0x218] sm:$0xff]  ;;  %v1418_v39 = vpack.c.bf16 %v490_v30, %v486_v29 }
  0x67   : > { %1537 = vmatprep.subr.bf16.mxu1 %v1536_v7  ;;  %v501_v37 = vld [vmem:[#allocation2 + $0x238] sm:$0xff]  ;;  %v1546_v40 = vpack.c.bf16 %v492_v33, %v488_v31  ;;  %v1420_v41 = vpack.c.bf16 %v499_v35, %v495_v34  ;;  %v494_v42 = vld [vmem:[#allocation2 + $0x200] sm:$0xff]  ;;  %v496_v44 = vld [vmem:[#allocation2 + $0x210] sm:$0xff] }
  0x68   : > { %v498_v43 = vld [vmem:[#allocation2 + $0x220] sm:$0xff]  ;;  %v1548_v45 = vpack.c.bf16 %v501_v37, %v497_v36  ;;  %v500_v46 = vld [vmem:[#allocation2 + $0x230] sm:$0xff]  ;;  %v503_v47 = vld [vmem:[#allocation2 + $0x248] sm:$0xff] }
  0x69   : > { %1411 = vmatpush1.bf16.msra.mxu0 %v1410_v13  ;;  %v507_v48 = vld [vmem:[#allocation2 + $0x268] sm:$0xff]  ;;  %v505_v49 = vld [vmem:[#allocation2 + $0x258] sm:$0xff]  ;;  %v1422_v52 = vpack.c.bf16 %v498_v43, %v494_v42  ;;  %v502_v53 = vld [vmem:[#allocation2 + $0x240] sm:$0xff]  ;;  %v1550_v54 = vpack.c.bf16 %v500_v46, %v496_v44 }
  0x6a   : > { %1539 = vmatpush1.bf16.msra.mxu1 %v1538_v14  ;;  %1413 = vmatprep.subr.bf16.mxu0 %v1412_v15  ;;  %v509_v50 = vld [vmem:[#allocation2 + $0x278] sm:$0xff]  ;;  %v1424_v55 = vpack.c.bf16 %v507_v48, %v503_v47  ;;  %v506_v56 = vld [vmem:[#allocation2 + $0x260] sm:$0xff]  ;;  %v504_v57 = vld [vmem:[#allocation2 + $0x250] sm:$0xff] }
  0x6b   : > { %1541 = vmatprep.subr.bf16.mxu1 %v1540_v19  ;;  %v508_v58 = vld [vmem:[#allocation2 + $0x270] sm:$0xff]  ;;  %v1552_v59 = vpack.c.bf16 %v509_v50, %v505_v49  ;;  %v511_v60 = vld [vmem:[#allocation2 + $0x288] sm:$0xff]  ;;  %v2092_v62 = vld [vmem:[%s2203_s1] sm:$0xff]  ;;  %v1426_v3 = vpack.c.bf16 %v506_v56, %v502_v53 }
  0x6c   : > { %v515_v61 = vld [vmem:[#allocation2 + $0x2a8] sm:$0xff]  ;;  %v513_v0 = vld [vmem:[#allocation2 + $0x298] sm:$0xff]  ;;  %v2096_v2 = vrot.slane %v2092_v62, %v322_v51  ;;  %v1554_v4 = vpack.c.bf16 %v508_v58, %v504_v57  ;;  %v510_v6 = vld [vmem:[#allocation2 + $0x280] sm:$0xff]  ;;  %v2099_v13 = vrot.slane %v2092_v62, %v366_v63 }
  0x6d   : > { %1415 = vmatpush1.bf16.msra.mxu0 %v1414_v26  ;;  %v517_v1 = vld [vmem:[#allocation2 + $0x2b8] sm:$0xff]  ;;  %v1428_v5 = vpack.c.bf16 %v515_v61, %v511_v60  ;;  %v514_v7 = vld [vmem:[#allocation2 + $0x2a0] sm:$0xff]  ;;  %v512_v8 = vld [vmem:[#allocation2 + $0x290] sm:$0xff] }
  0x6e   : > { %1543 = vmatpush1.bf16.msra.mxu1 %v1542_v27  ;;  %1417 = vmatprep.subr.bf16.mxu0 %v1416_v28  ;;  %v1556_v9 = vpack.c.bf16 %v517_v1, %v513_v0  ;;  %v516_v10 = vld [vmem:[#allocation2 + $0x2b0] sm:$0xff]  ;;  %v519_v11 = vld [vmem:[#allocation2 + $0x2c8] sm:$0xff]  ;;  %v521_v14 = vld [vmem:[#allocation2 + $0x2d8] sm:$0xff]  ;;  %v1430_v16 = vpack.c.bf16 %v514_v7, %v510_v6 }
  0x6f   : > { %1545 = vmatprep.subr.bf16.mxu1 %v1544_v32  ;;  %v523_v12 = vld [vmem:[#allocation2 + $0x2e8] sm:$0xff]  ;;  %v525_v15 = vld [vmem:[#allocation2 + $0x2f8] sm:$0xff]  ;;  %v1558_v17 = vpack.c.bf16 %v516_v10, %v512_v8  ;;  %v518_v19 = vld [vmem:[#allocation2 + $0x2c0] sm:$0xff] }
  0x70   : > { %v1432_v18 = vpack.c.bf16 %v523_v12, %v519_v11  ;;  %v522_v20 = vld [vmem:[#allocation2 + $0x2e0] sm:$0xff]  ;;  %v520_v21 = vld [vmem:[#allocation2 + $0x2d0] sm:$0xff]  ;;  %v1560_v22 = vpack.c.bf16 %v525_v15, %v521_v14  ;;  %v527_v24 = vld [vmem:[#allocation2 + $0x308] sm:$0xff] }
  0x71   : > { %1419 = vmatpush1.bf16.msra.mxu0 %v1418_v39  ;;  %v524_v23 = vld [vmem:[#allocation2 + $0x2f0] sm:$0xff]  ;;  %v531_v25 = vld [vmem:[#allocation2 + $0x328] sm:$0xff]  ;;  %v529_v26 = vld [vmem:[#allocation2 + $0x318] sm:$0xff]  ;;  %v1434_v28 = vpack.c.bf16 %v522_v20, %v518_v19  ;;  %v2102_v20 = vsub.s32 0, %v2086_v38 }
  0x72   : > { %1547 = vmatpush1.bf16.msra.mxu1 %v1546_v40  ;;  %1421 = vmatprep.subr.bf16.mxu0 %v1420_v41  ;;  %v533_v27 = vld [vmem:[#allocation2 + $0x338] sm:$0xff]  ;;  %v1562_v29 = vpack.c.bf16 %v524_v23, %v520_v21  ;;  %v1436_v30 = vpack.c.bf16 %v531_v25, %v527_v24  ;;  %v526_v31 = vld [vmem:[#allocation2 + $0x300] sm:$0xff]  ;;  %v528_v33 = vld [vmem:[#allocation2 + $0x310] sm:$0xff]  ;;  %v2105_v21 = vsub.s32 2, %v2086_v38  ;;  %v2109_v23 = vsub.s32 1, %v2086_v38 }
  0x73   : > { %1549 = vmatprep.subr.bf16.mxu1 %v1548_v45  ;;  %v530_v32 = vld [vmem:[#allocation2 + $0x320] sm:$0xff]  ;;  %v1564_v34 = vpack.c.bf16 %v533_v27, %v529_v26  ;;  %v532_v35 = vld [vmem:[#allocation2 + $0x330] sm:$0xff]  ;;  %v535_v36 = vld [vmem:[#allocation2 + $0x348] sm:$0xff]  ;;  %v2112_v24 = vsub.s32 3, %v2086_v38  ;;  %v370_v25 = vsub.s32 7, %v2086_v38  ;;  %v315_v26 = vrot.slane %v2092_v62, %v2102_v20 }
  0x74   : > { %v539_v37 = vld [vmem:[#allocation2 + $0x368] sm:$0xff]  ;;  %v537_v39 = vld [vmem:[#allocation2 + $0x358] sm:$0xff]  ;;  %v1438_v41 = vpack.c.bf16 %v530_v32, %v526_v31  ;;  %v1566_v42 = vpack.c.bf16 %v532_v35, %v528_v33  ;;  %v534_v44 = vld [vmem:[#allocation2 + $0x340] sm:$0xff]  ;;  %v319_v27 = vrot.slane %v2092_v62, %v2105_v21 }
  0x75   : > { %1423 = vmatpush1.bf16.msra.mxu0 %v1422_v52  ;;  %v541_v40 = vld [vmem:[#allocation2 + $0x378] sm:$0xff]  ;;  %v1440_v43 = vpack.c.bf16 %v539_v37, %v535_v36  ;;  %v538_v45 = vld [vmem:[#allocation2 + $0x360] sm:$0xff]  ;;  %v536_v46 = vld [vmem:[#allocation2 + $0x350] sm:$0xff]  ;;  %v363_v31 = vrot.slane %v2092_v62, %v2112_v24  ;;  %v371_v32 = vrot.slane %v2092_v62, %v370_v25  ;;  %v335_v33 = vrot.slane %v315_v26, %v2102_v20 }
  0x76   : > { %1551 = vmatpush1.bf16.msra.mxu1 %v1550_v54  ;;  %1425 = vmatprep.subr.bf16.mxu0 %v1424_v55  ;;  %v1568_v47 = vpack.c.bf16 %v541_v40, %v537_v39  ;;  %v540_v48 = vld [vmem:[#allocation2 + $0x370] sm:$0xff]  ;;  %v543_v49 = vld [vmem:[#allocation2 + $0x388] sm:$0xff]  ;;  %v545_v51 = vld [vmem:[#allocation2 + $0x398] sm:$0xff]  ;;  %v1442_v53 = vpack.c.bf16 %v538_v45, %v534_v44  ;;  %v387_v40 = vrot.slane %v2099_v13, %v2109_v23 }
  0x77   : > { %1553 = vmatprep.subr.bf16.mxu1 %v1552_v59  ;;  %v547_v50 = vld [vmem:[#allocation2 + $0x3a8] sm:$0xff]  ;;  %v549_v52 = vld [vmem:[#allocation2 + $0x3b8] sm:$0xff]  ;;  %v1570_v54 = vpack.c.bf16 %v540_v48, %v536_v46  ;;  %v542_v56 = vld [vmem:[#allocation2 + $0x380] sm:$0xff]  ;;  %v383_v39 = vrot.slane %v363_v31, %v2109_v23 }
  0x78   : > { %v1444_v55 = vpack.c.bf16 %v547_v50, %v543_v49  ;;  %v546_v57 = vld [vmem:[#allocation2 + $0x3a0] sm:$0xff]  ;;  %v544_v58 = vld [vmem:[#allocation2 + $0x390] sm:$0xff]  ;;  %v1572_v59 = vpack.c.bf16 %v549_v52, %v545_v51  ;;  %v551_v61 = vld [vmem:[#allocation2 + $0x3c8] sm:$0xff] }
  0x79   : > { %1427 = vmatpush1.bf16.msra.mxu0 %v1426_v3  ;;  %v548_v60 = vld [vmem:[#allocation2 + $0x3b0] sm:$0xff]  ;;  %v555_v63 = vld [vmem:[#allocation2 + $0x3e8] sm:$0xff]  ;;  %v553_v0 = vld [vmem:[#allocation2 + $0x3d8] sm:$0xff]  ;;  %v1446_v3 = vpack.c.bf16 %v546_v57, %v542_v56 }
  0x7a   : > { %1555 = vmatpush1.bf16.msra.mxu1 %v1554_v4  ;;  %1429 = vmatprep.subr.bf16.mxu0 %v1428_v5  ;;  %v557_v1 = vld [vmem:[#allocation2 + $0x3f8] sm:$0xff]  ;;  %v1574_v4 = vpack.c.bf16 %v548_v60, %v544_v58  ;;  %v1448_v5 = vpack.c.bf16 %v555_v63, %v551_v61  ;;  %v550_v6 = vld [vmem:[#allocation2 + $0x3c0] sm:$0xff]  ;;  %v552_v8 = vld [vmem:[#allocation2 + $0x3d0] sm:$0xff] }
  0x7b   : > { %1557 = vmatprep.subr.bf16.mxu1 %v1556_v9  ;;  %v554_v7 = vld [vmem:[#allocation2 + $0x3e0] sm:$0xff]  ;;  %v1576_v9 = vpack.c.bf16 %v557_v1, %v553_v0  ;;  %v556_v10 = vld [vmem:[#allocation2 + $0x3f0] sm:$0xff]  ;;  %v559_v11 = vld [vmem:[#allocation2 + $0x408] sm:$0xff] }
  0x7c   : > { %v563_v12 = vld [vmem:[#allocation2 + $0x428] sm:$0xff]  ;;  %v561_v14 = vld [vmem:[#allocation2 + $0x418] sm:$0xff]  ;;  %v558_v56 = vld [vmem:[#allocation2 + $0x400] sm:$0xff] }
  0x7d   : > { %1431 = vmatpush1.bf16.msra.mxu0 %v1430_v16  ;;  %v565_v15 = vld [vmem:[#allocation2 + $0x438] sm:$0xff]  ;;  %v1450_v16 = vpack.c.bf16 %v554_v7, %v550_v6  ;;  %v562_v57 = vld [vmem:[#allocation2 + $0x420] sm:$0xff]  ;;  %v560_v58 = vld [vmem:[#allocation2 + $0x410] sm:$0xff] }
  0x7e   : > { %1559 = vmatpush1.bf16.msra.mxu1 %v1558_v17  ;;  %1433 = vmatprep.subr.bf16.mxu0 %v1432_v18  ;;  %v1578_v17 = vpack.c.bf16 %v556_v10, %v552_v8  ;;  %v1452_v18 = vpack.c.bf16 %v563_v12, %v559_v11  ;;  %v1580_v19 = vpack.c.bf16 %v565_v15, %v561_v14  ;;  %v567_v0 = vld [vmem:[#allocation2 + $0x448] sm:$0xff]  ;;  %v566_v10 = vld [vmem:[#allocation2 + $0x440] sm:$0xff]  ;;  %v568_v12 = vld [vmem:[#allocation2 + $0x450] sm:$0xff] }
  0x7f   : > { %1561 = vmatprep.subr.bf16.mxu1 %v1560_v22  ;;  %v326_v22 = vsub.s32 6, %v2086_v38  ;;  %v1454_v8 = vpack.c.bf16 %v562_v57, %v558_v56  ;;  %v570_v11 = vld [vmem:[#allocation2 + $0x460] sm:$0xff]  ;;  %v572_v14 = vld [vmem:[#allocation2 + $0x470] sm:$0xff]  ;;  %v575_v15 = vld [vmem:[#allocation2 + $0x488] sm:$0xff] }
  0x80   : > { %v1458_v26 = vpack.c.bf16 %v570_v11, %v566_v10  ;;  %v603_v56 = vld [vmem:[#allocation2 + $0x568] sm:$0xff]  ;;  %v601_v57 = vld [vmem:[#allocation2 + $0x558] sm:$0xff] }
  0x81   : > { %1435 = vmatpush1.bf16.msra.mxu0 %v1434_v28  ;;  %v327_v28 = vrot.slane %v2092_v62, %v326_v22  ;;  %v581_v22 = vld [vmem:[#allocation2 + $0x4b8] sm:$0xff] }
  0x82   : > { %1563 = vmatpush1.bf16.msra.mxu1 %v1562_v29  ;;  %1437 = vmatprep.subr.bf16.mxu0 %v1436_v30  ;;  %v343_v29 = vrot.slane %v2096_v2, %v2102_v20  ;;  %v359_v30 = vrot.slane %v2092_v62, %v2109_v23  ;;  %v400_v2 = vld [vmem:[%s2204_s2] sm:$0xf]  ;;  %v391_v62 = vrot.slane %v371_v32, %v2109_v23  ;;  %v576_v32 = vld [vmem:[#allocation2 + $0x490] sm:$0xff] }
  0x83   : > { %1565 = vmatprep.subr.bf16.mxu1 %v1564_v34  ;;  %v339_v34 = vrot.slane %v319_v27, %v2102_v20  ;;  %v347_v35 = vrot.slane %v327_v28, %v2102_v20  ;;  %v417_v52 = vrot.slane %v400_v2, %v2112_v24  ;;  %v1586_v27 = vpack.c.bf16 %v572_v14, %v568_v12  ;;  %v574_v28 = vld [vmem:[#allocation2 + $0x480] sm:$0xff] }
  0x84   : > { %v379_v37 = vrot.slane %v359_v30, %v2109_v23  ;;  %v606_v12 = vld [vmem:[#allocation2 + $0x580] sm:$0xff] }
  0x85   : > { %1439 = vmatpush1.bf16.msra.mxu0 %v1438_v41  ;;  %v413_v41 = vrot.slane %v400_v2, %v2105_v21  ;;  %v610_v14 = vld [vmem:[#allocation2 + $0x5a0] sm:$0xff] }
  0x86   : > { %1567 = vmatpush1.bf16.msra.mxu1 %v1566_v42  ;;  %1441 = vmatprep.subr.bf16.mxu0 %v1440_v43  ;;  %v409_v42 = vrot.slane %v400_v2, %v2109_v23 }
  0x87   : > { %1569 = vmatprep.subr.bf16.mxu1 %v1568_v47  ;;  %v405_v47 = vrot.slane %v400_v2, %v2102_v20 }
  0x89   : > { %1443 = vmatpush1.bf16.msra.mxu0 %v1442_v53 }
  0x8a   : > { %1571 = vmatpush1.bf16.msra.mxu1 %v1570_v54  ;;  %1445 = vmatprep.subr.bf16.mxu0 %v1444_v55 }
  0x8b   : > { %1573 = vmatprep.subr.bf16.mxu1 %v1572_v59  ;;  %v564_v59 = vld [vmem:[#allocation2 + $0x430] sm:$0xff] }
  0x8d   : > { %1447 = vmatpush1.bf16.msra.mxu0 %v1446_v3  ;;  %v571_v3 = vld [vmem:[#allocation2 + $0x468] sm:$0xff] }
  0x8e   : > { %1575 = vmatpush1.bf16.msra.mxu1 %v1574_v4  ;;  %1449 = vmatprep.subr.bf16.mxu0 %v1448_v5  ;;  %v569_v4 = vld [vmem:[#allocation2 + $0x458] sm:$0xff] }
  0x8f   : > { %1577 = vmatprep.subr.bf16.mxu1 %v1576_v9  ;;  %v573_v5 = vld [vmem:[#allocation2 + $0x478] sm:$0xff]  ;;  %v1582_v9 = vpack.c.bf16 %v564_v59, %v560_v58 }
  0x90   : > { %v605_v58 = vld [vmem:[#allocation2 + $0x578] sm:$0xff] }
  0x91   : > { %1451 = vmatpush1.bf16.msra.mxu0 %v1450_v16  ;;  %v1456_v16 = vpack.c.bf16 %v571_v3, %v567_v0  ;;  %v602_v0 = vld [vmem:[#allocation2 + $0x560] sm:$0xff]  ;;  %v1600_v3 = vpack.c.bf16 %v605_v58, %v601_v57  ;;  %v643_v57 = vld [vmem:[#allocation2 + $0x6a8] sm:$0xff]  ;;  %v641_v58 = vld [vmem:[#allocation2 + $0x698] sm:$0xff] }
  0x92   : > { %1579 = vmatpush1.bf16.msra.mxu1 %v1578_v17  ;;  %1453 = vmatprep.subr.bf16.mxu0 %v1452_v18  ;;  %v1584_v17 = vpack.c.bf16 %v573_v5, %v569_v4  ;;  %v579_v18 = vld [vmem:[#allocation2 + $0x4a8] sm:$0xff]  ;;  %v600_v4 = vld [vmem:[#allocation2 + $0x550] sm:$0xff] }
  0x93   : > { %1581 = vmatprep.subr.bf16.mxu1 %v1580_v19  ;;  %v577_v19 = vld [vmem:[#allocation2 + $0x498] sm:$0xff]  ;;  %v1460_v30 = vpack.c.bf16 %v579_v18, %v575_v15  ;;  %v604_v5 = vld [vmem:[#allocation2 + $0x570] sm:$0xff] }
  0x94   : > { %v1588_v31 = vpack.c.bf16 %v581_v22, %v577_v19  ;;  %v1602_v11 = vpack.c.bf16 %v604_v5, %v600_v4  ;;  %v612_v18 = vld [vmem:[#allocation2 + $0x5b0] sm:$0xff]  ;;  %v615_v19 = vld [vmem:[#allocation2 + $0x5c8] sm:$0xff] }
  0x95   : > { %v619_v22 = vld [vmem:[#allocation2 + $0x5e8] sm:$0xff]  ;;  %v640_v5 = vld [vmem:[#allocation2 + $0x690] sm:$0xff] }
  0xd6   : > { %v309_v38 = vpop.permute.xlu0 %308 }
  0xd7   : > { %v350_v36 = vmul.f32 %v343_v29, %v309_v38  ;;  %v348_v43 = vmul.f32 %v335_v33, %v309_v38  ;;  %v349_v44 = vmul.f32 %v339_v34, %v309_v38  ;;  %v351_v45 = vmul.f32 %v347_v35, %v309_v38  ;;  %v578_v29 = vld [vmem:[#allocation2 + $0x4a0] sm:$0xff]  ;;  %v580_v38 = vld [vmem:[#allocation2 + $0x4b0] sm:$0xff]  ;;  %v583_v33 = vld [vmem:[#allocation2 + $0x4c8] sm:$0xff] }
  0xd8   : > { %v587_v34 = vld [vmem:[#allocation2 + $0x4e8] sm:$0xff]  ;;  %v585_v35 = vld [vmem:[#allocation2 + $0x4d8] sm:$0xff]  ;;  %v1462_v2 = vpack.c.bf16 %v578_v29, %v574_v28  ;;  %v614_v29 = vld [vmem:[#allocation2 + $0x5c0] sm:$0xff] }
  0xdb   : > { %v354_v46 = vpop.permute.xlu0 %353 }
  0xdc   : > { %v392_v48 = vmul.f32 %v379_v37, %v354_v46  ;;  %v393_v49 = vmul.f32 %v383_v39, %v354_v46  ;;  %v394_v50 = vmul.f32 %v387_v40, %v354_v46  ;;  %v395_v51 = vmul.f32 %v391_v62, %v354_v46  ;;  %v582_v39 = vld [vmem:[#allocation2 + $0x4c0] sm:$0xff]  ;;  %v593_v46 = vld [vmem:[#allocation2 + $0x518] sm:$0xff] }
  0xdd   : > { %v1590_v37 = vpack.c.bf16 %v580_v38, %v576_v32  ;;  %v586_v40 = vld [vmem:[#allocation2 + $0x4e0] sm:$0xff]  ;;  %v1464_v62 = vpack.c.bf16 %v587_v34, %v583_v33  ;;  %v616_v38 = vld [vmem:[#allocation2 + $0x5d0] sm:$0xff]  ;;  %v623_v34 = vld [vmem:[#allocation2 + $0x608] sm:$0xff] }
  0xde   : > { %v396_v53 = vadd.f32 %v392_v48, %v348_v43  ;;  %v398_v13 = vadd.f32 %v394_v50, %v350_v36  ;;  %v399_v54 = vadd.f32 %v395_v51, %v351_v45  ;;  %v397_v55 = vadd.f32 %v393_v49, %v349_v44  ;;  %v589_v36 = vld [vmem:[#allocation2 + $0x4f8] sm:$0xff]  ;;  %v588_v43 = vld [vmem:[#allocation2 + $0x4f0] sm:$0xff]  ;;  %v591_v44 = vld [vmem:[#allocation2 + $0x508] sm:$0xff] }
  0xdf   : > { %v595_v45 = vld [vmem:[#allocation2 + $0x528] sm:$0xff]  ;;  %v1466_v48 = vpack.c.bf16 %v586_v40, %v582_v39  ;;  %v590_v50 = vld [vmem:[#allocation2 + $0x500] sm:$0xff]  ;;  %v620_v33 = vld [vmem:[#allocation2 + $0x5f0] sm:$0xff] }
  0xe0   : > { %v2142_v60 = vadd.f32 %v413_v41, %v398_v13  ;;  %v423_v61 = vadd.f32 %v409_v42, %v397_v55  ;;  %v422_v63 = vadd.f32 %v405_v47, %v396_v53  ;;  %v425_v1 = vadd.f32 %v417_v52, %v399_v54  ;;  %v584_v42 = vld [vmem:[#allocation2 + $0x4d0] sm:$0xff]  ;;  %v597_v47 = vld [vmem:[#allocation2 + $0x538] sm:$0xff]  ;;  %v594_v51 = vld [vmem:[#allocation2 + $0x520] sm:$0xff] }
  0xe1   : > { %v1592_v41 = vpack.c.bf16 %v589_v36, %v585_v35  ;;  %v1594_v49 = vpack.c.bf16 %v588_v43, %v584_v42  ;;  %v1468_v52 = vpack.c.bf16 %v595_v45, %v591_v44  ;;  %v1596_v53 = vpack.c.bf16 %v597_v47, %v593_v46  ;;  %v592_v13 = vld [vmem:[#allocation2 + $0x510] sm:$0xff]  ;;  %v599_v55 = vld [vmem:[#allocation2 + $0x548] sm:$0xff]  ;;  %v625_v36 = vld [vmem:[#allocation2 + $0x618] sm:$0xff] }
  0xe2   : > { %v427_v6 = vmax.f32 %v423_v61, 0.0  ;;  %v426_v7 = vmax.f32 %v422_v63, 0.0  ;;  %v429_v25 = vmax.f32 %v425_v1, 0.0  ;;  %v596_v54 = vld [vmem:[#allocation2 + $0x530] sm:$0xff]  ;;  %v1470_v59 = vpack.c.bf16 %v594_v51, %v590_v50  ;;  %v598_v63 = vld [vmem:[#allocation2 + $0x540] sm:$0xff]  ;;  %v627_v35 = vld [vmem:[#allocation2 + $0x628] sm:$0xff] }
  0xe3   : > { %v1598_v61 = vpack.c.bf16 %v596_v54, %v592_v13  ;;  %v1472_v1 = vpack.c.bf16 %v603_v56, %v599_v55  ;;  %v1474_v10 = vpack.c.bf16 %v602_v0, %v598_v63  ;;  %v1610_v39 = vpack.c.bf16 %v620_v33, %v616_v38  ;;  %v622_v40 = vld [vmem:[#allocation2 + $0x600] sm:$0xff]  ;;  %v624_v43 = vld [vmem:[#allocation2 + $0x610] sm:$0xff]  ;;  %v631_v45 = vld [vmem:[#allocation2 + $0x648] sm:$0xff] }
  0xe4   : > { %772 = vmatprep.mubr.f32.mxu0 %v427_v6  ;;  %914 = vmatprep.mubr.f32.mxu1 %v427_v6  ;;  %v607_v6 = vld [vmem:[#allocation2 + $0x588] sm:$0xff]  ;;  %v628_v44 = vld [vmem:[#allocation2 + $0x630] sm:$0xff]  ;;  %v633_v47 = vld [vmem:[#allocation2 + $0x658] sm:$0xff] }
  0xe5   : > { %773 = vmatmul.mubr.f32.vlgmr.msra.gmra.mrb[0].mxu0 %v426_v7  ;;  %915 = vmatmul.mubr.f32.vlgmr.msra.gmra.mrb[0].mxu1 %v426_v7  ;;  %v611_v7 = vld [vmem:[#allocation2 + $0x5a8] sm:$0xff]  ;;  %v1614_v50 = vpack.c.bf16 %v628_v44, %v624_v43  ;;  %v630_v51 = vld [vmem:[#allocation2 + $0x640] sm:$0xff]  ;;  %v632_v54 = vld [vmem:[#allocation2 + $0x650] sm:$0xff] }
  0xe6   : > { %1455 = vmatpush1.bf16.msra.mxu0 %v1454_v8  ;;  %1583 = vmatpush1.bf16.msra.mxu1 %v1582_v9  ;;  %v609_v8 = vld [vmem:[#allocation2 + $0x598] sm:$0xff]  ;;  %v1476_v15 = vpack.c.bf16 %v611_v7, %v607_v6  ;;  %v635_v46 = vld [vmem:[#allocation2 + $0x668] sm:$0xff]  ;;  %v636_v55 = vld [vmem:[#allocation2 + $0x670] sm:$0xff] }
  0xe7   : > { %843 = vmatprep.mubr.f32.mxu0 %v429_v25  ;;  %985 = vmatprep.mubr.f32.mxu1 %v429_v25  ;;  %v613_v9 = vld [vmem:[#allocation2 + $0x5b8] sm:$0xff]  ;;  %v639_v56 = vld [vmem:[#allocation2 + $0x688] sm:$0xff]  ;;  %v1618_v63 = vpack.c.bf16 %v636_v55, %v632_v54  ;;  %v638_v0 = vld [vmem:[#allocation2 + $0x680] sm:$0xff] }
  0xe8   : > { %1457 = vmatprep.subr.bf16.mxu0 %v1456_v16  ;;  %1585 = vmatprep.subr.bf16.mxu1 %v1584_v17  ;;  %v1604_v16 = vpack.c.bf16 %v613_v9, %v609_v8  ;;  %v608_v17 = vld [vmem:[#allocation2 + $0x590] sm:$0xff]  ;;  %v617_v25 = vld [vmem:[#allocation2 + $0x5d8] sm:$0xff]  ;;  %v647_v7 = vld [vmem:[#allocation2 + $0x6c8] sm:$0xff] }
  0xe9   : > { %v1606_v28 = vpack.c.bf16 %v612_v18, %v608_v17  ;;  %v644_v6 = vld [vmem:[#allocation2 + $0x6b0] sm:$0xff]  ;;  %v651_v8 = vld [vmem:[#allocation2 + $0x6e8] sm:$0xff]  ;;  %v649_v9 = vld [vmem:[#allocation2 + $0x6d8] sm:$0xff] }
  0xea   : > { %1459 = vmatpush1.bf16.msra.mxu0 %v1458_v26  ;;  %1587 = vmatpush1.bf16.msra.mxu1 %v1586_v27  ;;  %v621_v26 = vld [vmem:[#allocation2 + $0x5f8] sm:$0xff]  ;;  %v1478_v27 = vpack.c.bf16 %v610_v14, %v606_v12  ;;  %v1622_v12 = vpack.c.bf16 %v644_v6, %v640_v5  ;;  %v646_v14 = vld [vmem:[#allocation2 + $0x6c0] sm:$0xff]  ;;  %v648_v18 = vld [vmem:[#allocation2 + $0x6d0] sm:$0xff] }
  0xeb   : > { %1461 = vmatprep.subr.bf16.mxu0 %v1460_v30  ;;  %1589 = vmatprep.subr.bf16.mxu1 %v1588_v31  ;;  %v618_v30 = vld [vmem:[#allocation2 + $0x5e0] sm:$0xff]  ;;  %v1480_v31 = vpack.c.bf16 %v619_v22, %v615_v19  ;;  %v1608_v32 = vpack.c.bf16 %v621_v26, %v617_v25  ;;  %v652_v19 = vld [vmem:[#allocation2 + $0x6f0] sm:$0xff]  ;;  %v655_v22 = vld [vmem:[#allocation2 + $0x708] sm:$0xff] }
  0xec   : > { %v659_v25 = vld [vmem:[#allocation2 + $0x728] sm:$0xff]  ;;  %v657_v26 = vld [vmem:[#allocation2 + $0x718] sm:$0xff]  ;;  %v656_v33 = vld [vmem:[#allocation2 + $0x710] sm:$0xff] }
  0xed   : > { %v664_v44 = vld [vmem:[#allocation2 + $0x750] sm:$0xff] }
  0xee   : > { %1463 = vmatpush1.bf16.msra.mxu0 %v1462_v2  ;;  %1591 = vmatpush1.bf16.msra.mxu1 %v1590_v37  ;;  %v629_v2 = vld [vmem:[#allocation2 + $0x638] sm:$0xff]  ;;  %v1482_v37 = vpack.c.bf16 %v618_v30, %v614_v29  ;;  %v1626_v29 = vpack.c.bf16 %v652_v19, %v648_v18  ;;  %v654_v30 = vld [vmem:[#allocation2 + $0x700] sm:$0xff]  ;;  %v672_v55 = vld [vmem:[#allocation2 + $0x790] sm:$0xff] }
  0xef   : > { %1465 = vmatprep.subr.bf16.mxu0 %v1464_v62  ;;  %1593 = vmatprep.subr.bf16.mxu1 %v1592_v41  ;;  %v626_v62 = vld [vmem:[#allocation2 + $0x620] sm:$0xff]  ;;  %v1484_v41 = vpack.c.bf16 %v627_v35, %v623_v34  ;;  %v1612_v42 = vpack.c.bf16 %v629_v2, %v625_v36  ;;  %v660_v34 = vld [vmem:[#allocation2 + $0x730] sm:$0xff]  ;;  %v663_v35 = vld [vmem:[#allocation2 + $0x748] sm:$0xff] }
  0xf0   : > { %v667_v36 = vld [vmem:[#allocation2 + $0x768] sm:$0xff]  ;;  %v665_v2 = vld [vmem:[#allocation2 + $0x758] sm:$0xff]  ;;  %v680_v6 = vld [vmem:[#allocation2 + $0x7d0] sm:$0xff] }
  0xf1   : > { %v1028_v19 = vld [vmem:[#allocation5 + $0x100] sm:$0xff] }
  0xf2   : > { %1467 = vmatpush1.bf16.msra.mxu0 %v1466_v48  ;;  %1595 = vmatpush1.bf16.msra.mxu1 %v1594_v49  ;;  %v637_v48 = vld [vmem:[#allocation2 + $0x678] sm:$0xff]  ;;  %v1486_v49 = vpack.c.bf16 %v626_v62, %v622_v40  ;;  %v1630_v40 = vpack.c.bf16 %v660_v34, %v656_v33  ;;  %v662_v62 = vld [vmem:[#allocation2 + $0x740] sm:$0xff] }
  0xf3   : > { %1469 = vmatprep.subr.bf16.mxu0 %v1468_v52  ;;  %1597 = vmatprep.subr.bf16.mxu1 %v1596_v53  ;;  %v634_v52 = vld [vmem:[#allocation2 + $0x660] sm:$0xff]  ;;  %v1488_v53 = vpack.c.bf16 %v635_v46, %v631_v45  ;;  %v1616_v13 = vpack.c.bf16 %v637_v48, %v633_v47  ;;  %v668_v45 = vld [vmem:[#allocation2 + $0x770] sm:$0xff]  ;;  %v671_v46 = vld [vmem:[#allocation2 + $0x788] sm:$0xff] }
  0xf4   : > { %v675_v47 = vld [vmem:[#allocation2 + $0x7a8] sm:$0xff]  ;;  %v673_v48 = vld [vmem:[#allocation2 + $0x798] sm:$0xff] }
  0xf6   : > { %1471 = vmatpush1.bf16.msra.mxu0 %v1470_v59  ;;  %1599 = vmatpush1.bf16.msra.mxu1 %v1598_v61  ;;  %v645_v59 = vld [vmem:[#allocation2 + $0x6b8] sm:$0xff]  ;;  %v1490_v61 = vpack.c.bf16 %v634_v52, %v630_v51  ;;  %v1634_v51 = vpack.c.bf16 %v668_v45, %v664_v44  ;;  %v670_v52 = vld [vmem:[#allocation2 + $0x780] sm:$0xff] }
  0xf7   : > { %1473 = vmatprep.subr.bf16.mxu0 %v1472_v1  ;;  %1601 = vmatprep.subr.bf16.mxu1 %v1600_v3  ;;  %v642_v1 = vld [vmem:[#allocation2 + $0x6a0] sm:$0xff]  ;;  %v1492_v3 = vpack.c.bf16 %v643_v57, %v639_v56  ;;  %v1620_v4 = vpack.c.bf16 %v645_v59, %v641_v58  ;;  %v676_v56 = vld [vmem:[#allocation2 + $0x7b0] sm:$0xff]  ;;  %v679_v57 = vld [vmem:[#allocation2 + $0x7c8] sm:$0xff] }
  0xf8   : > { %v683_v58 = vld [vmem:[#allocation2 + $0x7e8] sm:$0xff]  ;;  %v681_v59 = vld [vmem:[#allocation2 + $0x7d8] sm:$0xff]  ;;  %v1032_v45 = vld [vmem:[#allocation5 + $0x120] sm:$0xff] }
  0xfa   : > { %1475 = vmatpush1.bf16.msra.mxu0 %v1474_v10  ;;  %1603 = vmatpush1.bf16.msra.mxu1 %v1602_v11  ;;  %v653_v10 = vld [vmem:[#allocation2 + $0x6f8] sm:$0xff]  ;;  %v1494_v11 = vpack.c.bf16 %v642_v1, %v638_v0  ;;  %v1638_v0 = vpack.c.bf16 %v676_v56, %v672_v55  ;;  %v678_v1 = vld [vmem:[#allocation2 + $0x7c0] sm:$0xff]  ;;  %v1034_v56 = vld [vmem:[#allocation5 + $0x130] sm:$0xff] }
  0xfb   : > { %1477 = vmatprep.subr.bf16.mxu0 %v1476_v15  ;;  %1605 = vmatprep.subr.bf16.mxu1 %v1604_v16  ;;  %v650_v15 = vld [vmem:[#allocation2 + $0x6e0] sm:$0xff]  ;;  %v1496_v16 = vpack.c.bf16 %v651_v8, %v647_v7  ;;  %v1624_v17 = vpack.c.bf16 %v653_v10, %v649_v9  ;;  %v684_v7 = vld [vmem:[#allocation2 + $0x7f0] sm:$0xff]  ;;  %v1013_v9 = vld [vmem:[#allocation5 + $0x88] sm:$0xff] }
  0xfc   : > { %v1012_v8 = vld [vmem:[#allocation5 + $0x80] sm:$0xff] }
  0xfd   : > { %v1044_v10 = vld [vmem:[#allocation5 + $0x180] sm:$0xff] }
  0xfe   : > { %1479 = vmatpush1.bf16.msra.mxu0 %v1478_v27  ;;  %1607 = vmatpush1.bf16.msra.mxu1 %v1606_v28  ;;  %v661_v27 = vld [vmem:[#allocation2 + $0x738] sm:$0xff]  ;;  %v1498_v28 = vpack.c.bf16 %v650_v15, %v646_v14  ;;  %v1642_v14 = vpack.c.bf16 %v684_v7, %v680_v6  ;;  %v996_v15 = vld [vmem:[#allocation5] sm:$0xff] }
  0xff   : > { %1481 = vmatprep.subr.bf16.mxu0 %v1480_v31  ;;  %1609 = vmatprep.subr.bf16.mxu1 %v1608_v32  ;;  %v658_v31 = vld [vmem:[#allocation2 + $0x720] sm:$0xff]  ;;  %v1500_v32 = vpack.c.bf16 %v659_v25, %v655_v22  ;;  %v1628_v38 = vpack.c.bf16 %v661_v27, %v657_v26  ;;  %v1029_v22 = vld [vmem:[#allocation5 + $0x108] sm:$0xff]  ;;  %v1014_v25 = vld [vmem:[#allocation5 + $0x90] sm:$0xff] }
 0x100   : > { %v1015_v26 = vld [vmem:[#allocation5 + $0x98] sm:$0xff]  ;;  %v1046_v27 = vld [vmem:[#allocation5 + $0x190] sm:$0xff]  ;;  %v1036_v7 = vld [vmem:[#allocation5 + $0x140] sm:$0xff] }
 0x101   : > { %v1648_v33 = vpack.c.bf16 %v1015_v26, %v1014_v25  ;;  %v1039_v25 = vld [vmem:[#allocation5 + $0x158] sm:$0xff]  ;;  %v1024_v26 = vld [vmem:[#allocation5 + $0xe0] sm:$0xff] }
 0x102   : > { %1483 = vmatpush1.bf16.msra.mxu0 %v1482_v37  ;;  %1611 = vmatpush1.bf16.msra.mxu1 %v1610_v39  ;;  %v669_v37 = vld [vmem:[#allocation2 + $0x778] sm:$0xff]  ;;  %v1502_v39 = vpack.c.bf16 %v658_v31, %v654_v30  ;;  %v1678_v30 = vpack.c.bf16 %v1029_v22, %v1028_v19  ;;  %v998_v31 = vld [vmem:[#allocation5 + $0x10] sm:$0xff] }
 0x103   : > { %1485 = vmatprep.subr.bf16.mxu0 %v1484_v41  ;;  %1613 = vmatprep.subr.bf16.mxu1 %v1612_v42  ;;  %v666_v41 = vld [vmem:[#allocation2 + $0x760] sm:$0xff]  ;;  %v1504_v42 = vpack.c.bf16 %v667_v36, %v663_v35  ;;  %v1632_v43 = vpack.c.bf16 %v669_v37, %v665_v2  ;;  %v1030_v35 = vld [vmem:[#allocation5 + $0x110] sm:$0xff]  ;;  %v1031_v36 = vld [vmem:[#allocation5 + $0x118] sm:$0xff] }
 0x104   : > { %v1016_v2 = vld [vmem:[#allocation5 + $0xa0] sm:$0xff]  ;;  %v1017_v37 = vld [vmem:[#allocation5 + $0xa8] sm:$0xff]  ;;  %v1038_v22 = vld [vmem:[#allocation5 + $0x150] sm:$0xff] }
 0x106   : > { %1487 = vmatpush1.bf16.msra.mxu0 %v1486_v49  ;;  %1615 = vmatpush1.bf16.msra.mxu1 %v1614_v50  ;;  %v677_v49 = vld [vmem:[#allocation2 + $0x7b8] sm:$0xff]  ;;  %v1506_v50 = vpack.c.bf16 %v666_v41, %v662_v62  ;;  %v1682_v41 = vpack.c.bf16 %v1031_v36, %v1030_v35  ;;  %v1040_v35 = vld [vmem:[#allocation5 + $0x160] sm:$0xff] }
 0x107   : > { %1489 = vmatprep.subr.bf16.mxu0 %v1488_v53  ;;  %1617 = vmatprep.subr.bf16.mxu1 %v1616_v13  ;;  %v674_v53 = vld [vmem:[#allocation2 + $0x7a0] sm:$0xff]  ;;  %v1508_v13 = vpack.c.bf16 %v675_v47, %v671_v46  ;;  %v1636_v54 = vpack.c.bf16 %v677_v49, %v673_v48  ;;  %v1033_v46 = vld [vmem:[#allocation5 + $0x128] sm:$0xff]  ;;  %v1018_v47 = vld [vmem:[#allocation5 + $0xb0] sm:$0xff] }
 0x108   : > { %v1019_v48 = vld [vmem:[#allocation5 + $0xb8] sm:$0xff]  ;;  %v1050_v49 = vld [vmem:[#allocation5 + $0x1b0] sm:$0xff] }
 0x10a   : > { %1491 = vmatpush1.bf16.msra.mxu0 %v1490_v61  ;;  %1619 = vmatpush1.bf16.msra.mxu1 %v1618_v63  ;;  %v685_v61 = vld [vmem:[#allocation2 + $0x7f8] sm:$0xff]  ;;  %v1510_v63 = vpack.c.bf16 %v674_v53, %v670_v52  ;;  %v1686_v52 = vpack.c.bf16 %v1033_v46, %v1032_v45  ;;  %v1002_v53 = vld [vmem:[#allocation5 + $0x30] sm:$0xff] }
 0x10b   : > { %1493 = vmatprep.subr.bf16.mxu0 %v1492_v3  ;;  %1621 = vmatprep.subr.bf16.mxu1 %v1620_v4  ;;  %v682_v3 = vld [vmem:[#allocation2 + $0x7e0] sm:$0xff]  ;;  %v1512_v4 = vpack.c.bf16 %v683_v58, %v679_v57  ;;  %v1640_v5 = vpack.c.bf16 %v685_v61, %v681_v59  ;;  %v1035_v57 = vld [vmem:[#allocation5 + $0x138] sm:$0xff]  ;;  %v1021_v59 = vld [vmem:[#allocation5 + $0xc8] sm:$0xff] }
 0x10c   : > { %v1020_v58 = vld [vmem:[#allocation5 + $0xc0] sm:$0xff]  ;;  %v1042_v46 = vld [vmem:[#allocation5 + $0x170] sm:$0xff] }
 0x10d   : > { %v1052_v61 = vld [vmem:[#allocation5 + $0x1c0] sm:$0xff] }
 0x10e   : > { %1495 = vmatpush1.bf16.msra.mxu0 %v1494_v11  ;;  %1623 = vmatpush1.bf16.msra.mxu1 %v1622_v12  ;;  %v1045_v11 = vld [vmem:[#allocation5 + $0x188] sm:$0xff]  ;;  %v1514_v12 = vpack.c.bf16 %v682_v3, %v678_v1  ;;  %v1690_v1 = vpack.c.bf16 %v1035_v57, %v1034_v56  ;;  %v1004_v3 = vld [vmem:[#allocation5 + $0x40] sm:$0xff] }
 0x10f   : > { %1497 = vmatprep.subr.bf16.mxu0 %v1496_v16  ;;  %1625 = vmatprep.subr.bf16.mxu1 %v1624_v17  ;;  %v997_v16 = vld [vmem:[#allocation5 + $0x8] sm:$0xff]  ;;  %v1644_v17 = vpack.c.bf16 %v1013_v9, %v1012_v8  ;;  %v1676_v18 = vpack.c.bf16 %v1045_v11, %v1044_v10  ;;  %v1022_v9 = vld [vmem:[#allocation5 + $0xd0] sm:$0xff]  ;;  %v1023_v10 = vld [vmem:[#allocation5 + $0xd8] sm:$0xff] }
 0x110   : > { %v1037_v8 = vld [vmem:[#allocation5 + $0x148] sm:$0xff]  ;;  %v1054_v11 = vld [vmem:[#allocation5 + $0x1d0] sm:$0xff] }
 0x112   : > { %1499 = vmatpush1.bf16.msra.mxu0 %v1498_v28  ;;  %1627 = vmatpush1.bf16.msra.mxu1 %v1626_v29  ;;  %v1047_v28 = vld [vmem:[#allocation5 + $0x198] sm:$0xff]  ;;  %v1646_v29 = vpack.c.bf16 %v997_v16, %v996_v15  ;;  %v1694_v15 = vpack.c.bf16 %v1037_v8, %v1036_v7  ;;  %v1006_v16 = vld [vmem:[#allocation5 + $0x50] sm:$0xff] }
 0x113   : > { %1501 = vmatprep.subr.bf16.mxu0 %v1500_v32  ;;  %1629 = vmatprep.subr.bf16.mxu1 %v1628_v38  ;;  %v999_v32 = vld [vmem:[#allocation5 + $0x18] sm:$0xff]  ;;  %v428_v38 = vmax.f32 %v2142_v60, 0.0  ;;  %v1680_v34 = vpack.c.bf16 %v1047_v28, %v1046_v27  ;;  %v1652_v60 = vpack.c.bf16 %v1017_v37, %v1016_v2  ;;  %v1025_v27 = vld [vmem:[#allocation5 + $0xe8] sm:$0xff]  ;;  %v1056_v28 = vld [vmem:[#allocation5 + $0x1e0] sm:$0xff] }
 0x114   : > { %v1650_v62 = vpack.c.bf16 %v999_v32, %v998_v31  ;;  %v1698_v31 = vpack.c.bf16 %v1039_v25, %v1038_v22  ;;  %v1668_v32 = vpack.c.bf16 %v1025_v27, %v1024_v26  ;;  %v1041_v2 = vld [vmem:[#allocation5 + $0x168] sm:$0xff] }
 0x115   : > { %v1702_v37 = vpack.c.bf16 %v1041_v2, %v1040_v35 }
 0x116   : > { %1503 = vmatpush1.bf16.msra.mxu0 %v1502_v39  ;;  %1631 = vmatpush1.bf16.msra.mxu1 %v1630_v40  ;;  %v1048_v39 = vld [vmem:[#allocation5 + $0x1a0] sm:$0xff]  ;;  %v1049_v40 = vld [vmem:[#allocation5 + $0x1a8] sm:$0xff] }
 0x117   : > { %1505 = vmatprep.subr.bf16.mxu0 %v1504_v42  ;;  %1633 = vmatprep.subr.bf16.mxu1 %v1632_v43  ;;  %v1000_v42 = vld [vmem:[#allocation5 + $0x20] sm:$0xff]  ;;  %v1001_v43 = vld [vmem:[#allocation5 + $0x28] sm:$0xff]  ;;  %v1684_v44 = vpack.c.bf16 %v1049_v40, %v1048_v39  ;;  %v1026_v39 = vld [vmem:[#allocation5 + $0xf0] sm:$0xff] }
 0x118   : > { %v1027_v40 = vld [vmem:[#allocation5 + $0xf8] sm:$0xff] }
 0x11a   : > { %1507 = vmatpush1.bf16.msra.mxu0 %v1506_v50  ;;  %1635 = vmatpush1.bf16.msra.mxu1 %v1634_v51  ;;  %v1051_v50 = vld [vmem:[#allocation5 + $0x1b8] sm:$0xff]  ;;  %v1654_v51 = vpack.c.bf16 %v1001_v43, %v1000_v42  ;;  %v1010_v43 = vld [vmem:[#allocation5 + $0x70] sm:$0xff] }
 0x11b   : > { %1509 = vmatprep.subr.bf16.mxu0 %v1508_v13  ;;  %1637 = vmatprep.subr.bf16.mxu1 %v1636_v54  ;;  %v1003_v13 = vld [vmem:[#allocation5 + $0x38] sm:$0xff]  ;;  %v1656_v54 = vpack.c.bf16 %v1019_v48, %v1018_v47  ;;  %v1688_v55 = vpack.c.bf16 %v1051_v50, %v1050_v49  ;;  %v686_v49 = vld [vmem:[%s2206_s4] sm:$0xf] }
 0x11c   : > { %v1059_v42 = vld [vmem:[#allocation5 + $0x1f8] sm:$0xff]  ;;  %v691_v50 = vrot.slane %v686_v49, %v2102_v20 }
 0x11d   : > { %v1043_v47 = vld [vmem:[#allocation5 + $0x178] sm:$0xff] }
 0x11e   : > { %1511 = vmatpush1.bf16.msra.mxu0 %v1510_v63  ;;  %1639 = vmatpush1.bf16.msra.mxu1 %v1638_v0  ;;  %v1053_v63 = vld [vmem:[#allocation5 + $0x1c8] sm:$0xff]  ;;  %v1658_v0 = vpack.c.bf16 %v1003_v13, %v1002_v53  ;;  %v1706_v48 = vpack.c.bf16 %v1043_v47, %v1042_v46  ;;  %v703_v53 = vrot.slane %v686_v49, %v2112_v24  ;;  %v1313_v24 = vld [vmem:[%s2208_s6] ss:$0 sm:$0xff] }
 0x11f   : > { %1513 = vmatprep.subr.bf16.mxu0 %v1512_v4  ;;  %1641 = vmatprep.subr.bf16.mxu1 %v1640_v5  ;;  %v1005_v4 = vld [vmem:[#allocation5 + $0x48] sm:$0xff]  ;;  %v1660_v5 = vpack.c.bf16 %v1021_v59, %v1020_v58  ;;  %v1692_v6 = vpack.c.bf16 %v1053_v63, %v1052_v61 }
 0x122   : > { %1515 = vmatpush1.bf16.msra.mxu0 %v1514_v12  ;;  %1643 = vmatpush1.bf16.msra.mxu1 %v1642_v14  ;;  %v1055_v12 = vld [vmem:[#allocation5 + $0x1d8] sm:$0xff]  ;;  %v1662_v14 = vpack.c.bf16 %v1005_v4, %v1004_v3 }
 0x123   : > { %1645 = vmatprep.subr.bf16.mxu0 %v1644_v17  ;;  %1677 = vmatprep.subr.bf16.mxu1 %v1676_v18  ;;  %v1007_v17 = vld [vmem:[#allocation5 + $0x58] sm:$0xff]  ;;  %v1664_v18 = vpack.c.bf16 %v1023_v10, %v1022_v9  ;;  %v1696_v19 = vpack.c.bf16 %v1055_v12, %v1054_v11 }
 0x125   : > { %844 = vmatmul.mubr.f32.vlgmr.msra.gmra.mrb[0].mxu0 %v428_v38  ;;  %986 = vmatmul.mubr.f32.vlgmr.msra.gmra.mrb[0].mxu1 %v428_v38 }
 0x126   : > { %1647 = vmatpush3.bf16.msra.mxu0 %v1646_v29  ;;  %1679 = vmatpush3.bf16.msra.mxu1 %v1678_v30  ;;  %v1057_v29 = vld [vmem:[#allocation5 + $0x1e8] sm:$0xff]  ;;  %v1666_v30 = vpack.c.bf16 %v1007_v17, %v1006_v16 }
 0x127   : > { %1649 = vmatprep.subr.bf16.mxu0 %v1648_v33  ;;  %1681 = vmatprep.subr.bf16.mxu1 %v1680_v34  ;;  %v1700_v38 = vpack.c.bf16 %v1057_v29, %v1056_v28  ;;  %v1008_v33 = vld [vmem:[#allocation5 + $0x60] sm:$0xff]  ;;  %v1009_v34 = vld [vmem:[#allocation5 + $0x68] sm:$0xff] }
 0x128   : > { %v1670_v36 = vpack.c.bf16 %v1009_v34, %v1008_v33 }
 0x12a   : > { %1651 = vmatpush3.bf16.msra.mxu0 %v1650_v62  ;;  %1683 = vmatpush3.bf16.msra.mxu1 %v1682_v41  ;;  %v1058_v62 = vld [vmem:[#allocation5 + $0x1f0] sm:$0xff]  ;;  %v1672_v41 = vpack.c.bf16 %v1027_v40, %v1026_v39 }
 0x12b   : > { %1653 = vmatprep.subr.bf16.mxu0 %v1652_v60  ;;  %1685 = vmatprep.subr.bf16.mxu1 %v1684_v44  ;;  %v1011_v60 = vld [vmem:[#allocation5 + $0x78] sm:$0xff]  ;;  %v1704_v44 = vpack.c.bf16 %v1059_v42, %v1058_v62 }
 0x12c   : > { %v1674_v45 = vpack.c.bf16 %v1011_v60, %v1010_v43 }
 0x12e   : > { %1655 = vmatpush3.bf16.msra.mxu0 %v1654_v51  ;;  %1687 = vmatpush3.bf16.msra.mxu1 %v1686_v52  ;;  %v699_v51 = vrot.slane %v686_v49, %v2105_v21  ;;  %v695_v52 = vrot.slane %v686_v49, %v2109_v23 }
 0x12f   : > { %1657 = vmatprep.subr.bf16.mxu0 %v1656_v54  ;;  %1689 = vmatprep.subr.bf16.mxu1 %v1688_v55 }
 0x132   : > { %1659 = vmatpush3.bf16.msra.mxu0 %v1658_v0  ;;  %1691 = vmatpush3.bf16.msra.mxu1 %v1690_v1 }
 0x133   : > { %1661 = vmatprep.subr.bf16.mxu0 %v1660_v5  ;;  %1693 = vmatprep.subr.bf16.mxu1 %v1692_v6 }
 0x136   : > { %1663 = vmatpush3.bf16.msra.mxu0 %v1662_v14  ;;  %1695 = vmatpush3.bf16.msra.mxu1 %v1694_v15 }
 0x137   : > { %1665 = vmatprep.subr.bf16.mxu0 %v1664_v18  ;;  %1697 = vmatprep.subr.bf16.mxu1 %v1696_v19 }
 0x13a   : > { %1667 = vmatpush3.bf16.msra.mxu0 %v1666_v30  ;;  %1699 = vmatpush3.bf16.msra.mxu1 %v1698_v31 }
 0x13b   : > { %1669 = vmatprep.subr.bf16.mxu0 %v1668_v32  ;;  %1701 = vmatprep.subr.bf16.mxu1 %v1700_v38 }
 0x13e   : > { %1671 = vmatpush3.bf16.msra.mxu0 %v1670_v36  ;;  %1703 = vmatpush3.bf16.msra.mxu1 %v1702_v37 }
 0x13f   : > { %1673 = vmatprep.subr.bf16.mxu0 %v1672_v41  ;;  %1705 = vmatprep.subr.bf16.mxu1 %v1704_v44 }
 0x142   : > { %1675 = vmatpush3.bf16.msra.mxu0 %v1674_v45  ;;  %1707 = vmatpush3.bf16.msra.mxu1 %v1706_v48 }
 0x1f8   : > { %v845_v13 = vpop.f32.mrb[0].mxu0  ;;  %v987_v54 = vpop.f32.mrb[0].mxu1 }
 0x1f9   : > { %v1708_v55 = vadd.f32 %v845_v13, %v691_v50  ;;  %v1710_v56 = vadd.f32 %v987_v54, %v699_v51  ;;  %v847_v57 = vpop.f32.mrb[1].mxu0  ;;  %v989_v58 = vpop.f32.mrb[1].mxu1 }
 0x1fa   : > { %v1709_v59 = vadd.f32 %v847_v57, %v695_v52  ;;  %v1711_v61 = vadd.f32 %v989_v58, %v703_v53 }
 0x1fb   : > { %v992_v1 = vmax.f32 %v1708_v55, 0.0  ;;  %v994_v20 = vmax.f32 %v1710_v56, 0.0 }
 0x1fc   : > { %v993_v63 = vmax.f32 %v1709_v59, 0.0  ;;  %v995_v0 = vmax.f32 %v1711_v61, 0.0 }
 0x1fe   : > { %1131 = vmatprep.mubr.f32.mxu0 %v993_v63  ;;  %1201 = vmatprep.mubr.f32.mxu1 %v995_v0 }
 0x1ff   : > { %1132 = vmatmul.mubr.f32.vlgmr.msra.gmra.mrb[2].mxu0 %v992_v1  ;;  %1202 = vmatmul.mubr.f32.vlgmr.msra.gmra.mrb[2].mxu1 %v994_v20 }
 0x2d2   : > { %v1350_v21 = vpop.f32.mrb[2].mxu0  ;;  %v1385_v23 = vpop.f32.mrb[2].mxu1 }
 0x2d3   : > { %v1351_v3 = vpop.f32.mrb[3].mxu0  ;;  %v1386_v4 = vpop.f32.mrb[3].mxu1 }
 0x2d4   : > { %v1352_v5 = vadd.f32 %v1351_v3, %v1350_v21  ;;  %v1387_v6 = vadd.f32 %v1386_v4, %v1385_v23 }
 0x2d6   : > { %v1134_v7 = vadd.f32 %v1352_v5, %v1313_v24 }
 0x2d8   : > { %v1204_v8 = vadd.f32 %v1387_v6, %v1134_v7 }
 0x2da   : > { %1207 = vst [vmem:[%s299_s13] sm:$0xff] %v1204_v8 }
 0x2db   : > { %1853 = shalt.err (!%p1850_p11)
}
 0x2dc   : > { %s1854_s15 = scalar_lea.hbm %s2160_s22, 128  ;;  %s1858_s17 = scalar_lea.hbm %s2209_s7, 256 }
 0x2dd   : > { %p1855_p13 = scmp.ne.s32.totalorder %s2160_s22, %s1854_s15  ;;  %p1859_p6 = scmp.lt.u32.totalorder %s2160_s22, %s2209_s7 }
 0x2de   : > { %p1860_p9 = scmp.lt.u32.totalorder %s1858_s17, %s1854_s15  ;;  %p1862_p12 = scmp.lt.u32.totalorder %s1854_s15, %s2160_s22 }
 0x2df   : > { %p1856_p0 = pnand %p1855_p13, %p2223_p1 }
 0x2e0   : > { %p1861_p10 = por %p1860_p9, %p1859_p6 }
 0x2e1   : > { %p1857_p5 = pneg %p1856_p0 }
 0x2e2   : > { %p1863_p2 = por %p1862_p12, %p1861_p10 }
 0x2e4   : > { %p1864_p3 = pnand %p1863_p2, %p1857_p5 }
 0x2e6   : > { %1867 = shalt.err (!%p1864_p3)
}
 0x2e7   : > { %1724 = dma.vmem_to_hbm [thread:$0]  (%p2223_p1), %s2162_s18, 128, %s2160_s22, %s1209_s23  }
 0x2e8 PF: > { %p1741_p4 = scmp.ge.s32.totalorder %s1910_s27, 2  ;;  %s1234_s13 = sand.u32 1, %s1898_s24  }
 0x2e9   : > { %p2224_p7 = scmp.ne.s32.totalorder %s2215_s12, 0  ;;  %s1235_s20 = scalar_lea.sflag [#allocation4], %s1234_s13 }
 0x2eb   : > { %p1734_p8 = pnand %p1741_p4, %p2224_p7 }
 0x2ed   : > { %1893 = dma.done.wait (!%p1734_p8), %s1235_s20, 128  }
 0x2ee   : > { %1895 = vsyncadd (!%p1734_p8), %s1235_s20, 4294967168  ;;  %s2225_s21 = sld [smem:[#allocation11_spill]]  ;;  %p19_p11 = scmp.ge.s32.totalorder %s1986_s30, 4  }
 0x2ef   : > { %s2226_s24 = smov %s1902_s25  ;;  %s2227_s25 = smov %s1906_s26 }
 0x2f0   : > { %s2229_s27 = smov %s1986_s30  ;;  %21 = sbr.rel (!%p19_p11) target bundleno = 5 (0x5), region = 92 }
 0x2f4   : > { %s2228_s26 = smov %s2225_s21 }
 0x2f7   :  { %1240 = vsyncpa [#allocation3], 1 }
 0x2f8   :  { %1242 = vsyncpa [#allocation3 + $0x1], 1 }
 0x2f9   :  { %1243 = vsyncpa [#allocation6], 1 }
 0x2fa   :  { %1244 = vsyncpa [#allocation4], 1 }
 0x2fb   :  { %1246 = vsyncpa [#allocation4 + $0x1], 1 }

</bundles_post_ra>
